<compile_context>
chip_gen: v6e
topology: v6e:2x2x1
jax: 0.10.0
libtpu: 0.0.40
codegen_flags: <defaults>
</compile_context>

<pallas_src>
import jax
import jax.numpy as jnp
from jax import lax
from jax.experimental import pallas as pl
from jax.experimental.pallas import tpu as pltpu


# ----------------------------- kernel helpers -----------------------------

def _channel_attention(x, w1_ref, b1_ref, w2_ref, b2_ref):
    """ChannelAttention: GAP -> Linear -> ReLU -> Linear -> sigmoid -> scale.

    x: (C, HW) f32.  w1: (Hid, C), b1: (Hid, 1), w2: (C, Hid), b2: (C, 1).
    """
    y = jnp.mean(x, axis=1, keepdims=True)                               # (C, 1)
    y1 = jnp.dot(w1_ref[...], y, preferred_element_type=jnp.float32) + b1_ref[...]
    y1 = jnp.maximum(y1, 0.0)                                            # (Hid, 1)
    y2 = jnp.dot(w2_ref[...], y1, preferred_element_type=jnp.float32) + b2_ref[...]
    y2 = jax.nn.sigmoid(y2)                                              # (C, 1)
    return x * y2                                                        # (C, HW)


def _make_dse_kernel(h, w, hw, bt):
    """Build the kernel body with static H, W, H*W and batch-tile size."""
    taps = [(dy, dx) for dy in (-1, 0, 1) for dx in (-1, 0, 1)
            if not (dy == 0 and dx == 0)]

    def kernel(colmap_ref, rgb_ref, depth_ref, wsa1_ref, wsa2_ref,
               ca1_w1_ref, ca1_b1_ref, ca1_w2_ref, ca1_b2_ref,
               ca2_w1_ref, ca2_b1_ref, ca2_w2_ref, ca2_b2_ref,
               out_sum_ref, out_dep_ref):
        # --- batch-invariant prep, hoisted out of the per-element loop ------
        # Boundary masks for the 3x3 conv (padding=1 semantics), combined once
        # per (dy, dx) tap and shared by every batch element of the tile.
        pos = lax.broadcasted_iota(jnp.int32, (1, hw), 1)   # flat p = i*W + j
        col = colmap_ref[...]                               # p % W (precomputed)
        row_mask = {-1: pos >= w, 0: None, 1: pos < hw - w}
        col_mask = {-1: col >= 1, 0: None, 1: col < w - 1}
        valid = {}
        for dy, dx in taps:
            ms = [mk for mk in (row_mask[dy], col_mask[dx]) if mk is not None]
            valid[(dy, dx)] = ms[0] if len(ms) == 1 else ms[0] & ms[1]

        # 3x3 conv weights: one SMEM scalar read each per grid step (not per
        # batch element), shared between both spatial attentions.
        w1c = wsa1_ref[1, 1]
        w2c = wsa2_ref[1, 1]
        wtaps = [(wsa1_ref[dy + 1, dx + 1], wsa2_ref[dy + 1, dx + 1],
                  (-(dy * w + dx)) % hw, valid[(dy, dx)]) for dy, dx in taps]

        for bi in range(bt):
            rgb = rgb_ref[bi]       # (C, HW)
            depth = depth_ref[bi]   # (C, HW)

            # Shared channel-max + shared shifted taps feed BOTH spatial attns.
            m = jnp.max(depth, axis=0, keepdims=True)       # (1, HW)
            acc1 = w1c * m                                   # center tap
            acc2 = w2c * m
            for wa, wb, shift, vmask in wtaps:
                tap = jnp.where(vmask, pltpu.roll(m, shift=shift, axis=1), 0.0)
                acc1 = acc1 + wa * tap
                acc2 = acc2 + wb * tap
            map1 = jax.nn.sigmoid(acc1)                     # (1, HW)
            map2 = jax.nn.sigmoid(acc2)                     # (1, HW)

            rgb_sa = rgb * (map1 + 1.0)      # rgb * map_depth   + rgb
            dep_sa = depth * (map2 + 1.0)    # depth * map_depth2 + depth

            rgb_ca = _channel_attention(rgb_sa, ca1_w1_ref, ca1_b1_ref,
                                        ca1_w2_ref, ca1_b2_ref)
            dep_ca = _channel_attention(dep_sa, ca2_w1_ref, ca2_b1_ref,
                                        ca2_w2_ref, ca2_b2_ref)

            out_sum_ref[bi] = (rgb_ca + dep_ca).astype(out_sum_ref.dtype)
            out_dep_ref[bi] = dep_ca.astype(out_dep_ref.dtype)

    return kernel


# --------------------------------- wrapper ---------------------------------

def _pick_batch_tile(b, c, hw, budget_bytes=12 << 20):
    """Batch elements per grid step: large enough to amortize per-step overhead,
    small enough that 2 inputs + 2 outputs (double-buffered, f32) stay inside a
    VMEM budget that is safe under default scoped limits on v5e/v6e/v7x."""
    per_elem = 16 * c * hw                      # 4 tensors * 4 B * double-buffer
    bt = max(1, min(b, budget_bytes // max(per_elem, 1)))
    while bt > 1 and b // bt < 2:               # keep >= 2 grid steps (v7x: 2 TCs)
        bt -= 1
    while bt > 1 and b % bt:                    # keep the batch evenly divided
        bt -= 1
    return bt


def dse_forward(rgb_nchw, depth_nchw, params):
    """Pallas DSE forward. Inputs/outputs are NCHW float32 (PyTorch layout)."""
    b, c, h, w = rgb_nchw.shape
    hw = h * w
    hid = params["ca1_w1"].shape[0]

    # glue: merge trailing spatial dims (free reshape, no transpose, no copy).
    rgb = rgb_nchw.reshape(b, c, hw)
    depth = depth_nchw.reshape(b, c, hw)
    colmap = (jnp.arange(hw, dtype=jnp.int32) % w).reshape(1, hw)

    bt = _pick_batch_tile(b, c, hw)
    grid = (b // bt,)
    # TODO(synk): for very large H*W where one (C, H*W) element exceeds the VMEM
    # budget, add a spatially tiled path with a two-pass global-average-pool.

    io_spec = pl.BlockSpec((bt, c, hw), lambda i: (i, 0, 0))
    smem33 = pl.BlockSpec((3, 3), lambda i: (0, 0),
                          memory_space=pltpu.MemorySpace.SMEM)

    def vconst(shape):
        zeros = (0,) * len(shape)
        return pl.BlockSpec(shape, lambda i, _z=zeros: _z)

    args = (
        colmap, rgb, depth,
        params["sa1_w"], params["sa2_w"],
        params["ca1_w1"], params["ca1_b1"][:, None],
        params["ca1_w2"], params["ca1_b2"][:, None],
        params["ca2_w1"], params["ca2_b1"][:, None],
        params["ca2_w2"], params["ca2_b2"][:, None],
    )

    out_sum, out_dep = pl.pallas_call(
        _make_dse_kernel(h, w, hw, bt),
        out_shape=(jax.ShapeDtypeStruct((b, c, hw), jnp.float32),
                   jax.ShapeDtypeStruct((b, c, hw), jnp.float32)),
        grid=grid,
        in_specs=[
            vconst((1, hw)), io_spec, io_spec, smem33, smem33,
            vconst((hid, c)), vconst((hid, 1)), vconst((c, hid)), vconst((c, 1)),
            vconst((hid, c)), vconst((hid, 1)), vconst((c, hid)), vconst((c, 1)),
        ],
        out_specs=(io_spec, io_spec),
        compiler_params=pltpu.CompilerParams(
            dimension_semantics=("parallel",)),
    )(*args)

    # glue: split the spatial dims back (free reshape).
    return out_sum.reshape(b, c, h, w), out_dep.reshape(b, c, h, w)


# ---------------------------- pure-JAX reference ---------------------------

def dse_reference(rgb, depth, params):
    def spatial(x, wconv):
        m = jnp.max(x, axis=1, keepdims=True)
        out = lax.conv_general_dilated(
            m, wconv.reshape(1, 1, 3, 3), window_strides=(1, 1),
            padding=((1, 1), (1, 1)),
            dimension_numbers=("NCHW", "OIHW", "NCHW"))
        return jax.nn.sigmoid(out)

    def channel(x, w1, b1, w2, b2):
        y = jnp.mean(x, axis=(2, 3))
        y1 = jnp.maximum(y @ w1.T + b1, 0.0)
        y2 = jax.nn.sigmoid(y1 @ w2.T + b2)
        return x * y2[:, :, None, None]

    md1 = spatial(depth, params["sa1_w"])
    rgb_sa = rgb * md1 + rgb
    r = channel(rgb_sa, params["ca1_w1"], params["ca1_b1"],
                params["ca1_w2"], params["ca1_b2"])
    md2 = spatial(depth, params["sa2_w"])
    dep_sa = depth * md2 + depth
    d = channel(dep_sa, params["ca2_w1"], params["ca2_b1"],
                params["ca2_w2"], params["ca2_b2"])
    return r + d, d


# ------------------------------ parameter init ------------------------------

def init_params(key, channel, ratio=4):
    hid = channel // ratio
    ks = jax.random.split(key, 10)

    def u(k, shape, scale):
        return jax.random.uniform(k, shape, jnp.float32, -scale, scale)

    return {
        "sa1_w": u(ks[0], (3, 3), 0.5),              # Conv2d(1,1,3) weight
        "sa2_w": u(ks[1], (3, 3), 0.5),
        "ca1_w1": u(ks[2], (hid, channel), 0.5),     # Linear(channel -> hid)
        "ca1_b1": u(ks[3], (hid,), 0.5),
        "ca1_w2": u(ks[4], (channel, hid), 0.5),     # Linear(hid -> channel)
        "ca1_b2": u(ks[5], (channel,), 0.5),
        "ca2_w1": u(ks[6], (hid, channel), 0.5),
        "ca2_b1": u(ks[7], (hid,), 0.5),
        "ca2_w2": u(ks[8], (channel, hid), 0.5),
        "ca2_b2": u(ks[9], (channel,), 0.5),
    }


if __name__ == "__main__":
    B, C, H, W = 2, 8, 16, 16   # channel=8, ratio=4 -> hidden=2
    key = jax.random.PRNGKey(0)
    k_rgb, k_depth, k_params = jax.random.split(key, 3)
    input_rgb = jax.random.normal(k_rgb, (B, C, H, W), jnp.float32)
    input_depth = jax.random.normal(k_depth, (B, C, H, W), jnp.float32)
    params = init_params(k_params, C, ratio=4)

    out_sum, out_dep = jax.jit(dse_forward)(input_rgb, input_depth, params)
    jax.block_until_ready((out_sum, out_dep))

    ref_sum, ref_dep = dse_reference(input_rgb, input_depth, params)
    assert out_sum.shape == (B, C, H, W) and out_dep.shape == (B, C, H, W)
    assert jnp.allclose(out_sum, ref_sum, rtol=2e-3, atol=2e-3), \
        float(jnp.max(jnp.abs(out_sum - ref_sum)))
    assert jnp.allclose(out_dep, ref_dep, rtol=2e-3, atol=2e-3), \
        float(jnp.max(jnp.abs(out_dep - ref_dep)))
    print("KERNEL_OK")
</pallas_src>

<mosaic_0001>
module attributes {stable_mosaic.version = 11 : i64} {
  func.func @kernel(%arg0: i32, %arg1: memref<1x256xi32, #tpu.memory_space<vmem>>, %arg2: memref<1x8x256xf32, #tpu.memory_space<vmem>>, %arg3: memref<1x8x256xf32, #tpu.memory_space<vmem>>, %arg4: memref<3x3xf32, #tpu.memory_space<smem>>, %arg5: memref<3x3xf32, #tpu.memory_space<smem>>, %arg6: memref<2x8xf32, #tpu.memory_space<vmem>>, %arg7: memref<2x1xf32, #tpu.memory_space<vmem>>, %arg8: memref<8x2xf32, #tpu.memory_space<vmem>>, %arg9: memref<8x1xf32, #tpu.memory_space<vmem>>, %arg10: memref<2x8xf32, #tpu.memory_space<vmem>>, %arg11: memref<2x1xf32, #tpu.memory_space<vmem>>, %arg12: memref<8x2xf32, #tpu.memory_space<vmem>>, %arg13: memref<8x1xf32, #tpu.memory_space<vmem>>, %arg14: memref<1x8x256xf32, #tpu.memory_space<vmem>>, %arg15: memref<1x8x256xf32, #tpu.memory_space<vmem>>) attributes {dimension_semantics = [#tpu.dimension_semantics<parallel>], iteration_bounds = array<i64: 2>, scalar_prefetch = 0 : i64, scratch_operands = 0 : i64, tpu.core_type = #tpu.core_type<tc>, window_params = [{pipeline_mode = #tpu.pipeline_mode<synchronous>, transform_indices = @transform_0, window_bounds = array<i64: 1, 256>}, {transform_indices = @transform_1, window_bounds = array<i64: 1, 8, 256>}, {transform_indices = @transform_2, window_bounds = array<i64: 1, 8, 256>}, {transform_indices = @transform_3, window_bounds = array<i64: 3, 3>}, {transform_indices = @transform_4, window_bounds = array<i64: 3, 3>}, {pipeline_mode = #tpu.pipeline_mode<synchronous>, transform_indices = @transform_5, window_bounds = array<i64: 2, 8>}, {pipeline_mode = #tpu.pipeline_mode<synchronous>, transform_indices = @transform_6, window_bounds = array<i64: 2, 1>}, {pipeline_mode = #tpu.pipeline_mode<synchronous>, transform_indices = @transform_7, window_bounds = array<i64: 8, 2>}, {pipeline_mode = #tpu.pipeline_mode<synchronous>, transform_indices = @transform_8, window_bounds = array<i64: 8, 1>}, {pipeline_mode = #tpu.pipeline_mode<synchronous>, transform_indices = @transform_9, window_bounds = array<i64: 2, 8>}, {pipeline_mode = #tpu.pipeline_mode<synchronous>, transform_indices = @transform_10, window_bounds = array<i64: 2, 1>}, {pipeline_mode = #tpu.pipeline_mode<synchronous>, transform_indices = @transform_11, window_bounds = array<i64: 8, 2>}, {pipeline_mode = #tpu.pipeline_mode<synchronous>, transform_indices = @transform_12, window_bounds = array<i64: 8, 1>}, {transform_indices = @transform_13, window_bounds = array<i64: 1, 8, 256>}, {transform_indices = @transform_14, window_bounds = array<i64: 1, 8, 256>}]} {
    %0 = tpu.iota {dimensions = array<i32: 1>} : vector<1x256xi32>
    %c0 = arith.constant 0 : index
    %c0_0 = arith.constant 0 : index
    %1 = vector.load %arg1[%c0, %c0_0] : memref<1x256xi32, #tpu.memory_space<vmem>>, vector<1x256xi32>
    %c16_i32 = arith.constant 16 : i32
    %2 = vector.broadcast %c16_i32 : i32 to vector<1x256xi32>
    %3 = arith.cmpi sge, %0, %2 : vector<1x256xi32>
    %c240_i32 = arith.constant 240 : i32
    %4 = vector.broadcast %c240_i32 : i32 to vector<1x256xi32>
    %5 = arith.cmpi slt, %0, %4 : vector<1x256xi32>
    %c1_i32 = arith.constant 1 : i32
    %6 = vector.broadcast %c1_i32 : i32 to vector<1x256xi32>
    %7 = arith.cmpi sge, %1, %6 : vector<1x256xi32>
    %c15_i32 = arith.constant 15 : i32
    %8 = vector.broadcast %c15_i32 : i32 to vector<1x256xi32>
    %9 = arith.cmpi slt, %1, %8 : vector<1x256xi32>
    %10 = arith.andi %3, %7 : vector<1x256xi1>
    %11 = arith.andi %3, %9 : vector<1x256xi1>
    %12 = arith.andi %5, %7 : vector<1x256xi1>
    %13 = arith.andi %5, %9 : vector<1x256xi1>
    %c1 = arith.constant 1 : index
    %c1_1 = arith.constant 1 : index
    %14 = memref.load %arg4[%c1, %c1_1] : memref<3x3xf32, #tpu.memory_space<smem>>
    %c1_2 = arith.constant 1 : index
    %c1_3 = arith.constant 1 : index
    %15 = memref.load %arg5[%c1_2, %c1_3] : memref<3x3xf32, #tpu.memory_space<smem>>
    %c0_4 = arith.constant 0 : index
    %c0_5 = arith.constant 0 : index
    %16 = memref.load %arg4[%c0_4, %c0_5] : memref<3x3xf32, #tpu.memory_space<smem>>
    %c0_6 = arith.constant 0 : index
    %c0_7 = arith.constant 0 : index
    %17 = memref.load %arg5[%c0_6, %c0_7] : memref<3x3xf32, #tpu.memory_space<smem>>
    %c0_8 = arith.constant 0 : index
    %c1_9 = arith.constant 1 : index
    %18 = memref.load %arg4[%c0_8, %c1_9] : memref<3x3xf32, #tpu.memory_space<smem>>
    %c0_10 = arith.constant 0 : index
    %c1_11 = arith.constant 1 : index
    %19 = memref.load %arg5[%c0_10, %c1_11] : memref<3x3xf32, #tpu.memory_space<smem>>
    %c0_12 = arith.constant 0 : index
    %c2 = arith.constant 2 : index
    %20 = memref.load %arg4[%c0_12, %c2] : memref<3x3xf32, #tpu.memory_space<smem>>
    %c0_13 = arith.constant 0 : index
    %c2_14 = arith.constant 2 : index
    %21 = memref.load %arg5[%c0_13, %c2_14] : memref<3x3xf32, #tpu.memory_space<smem>>
    %c1_15 = arith.constant 1 : index
    %c0_16 = arith.constant 0 : index
    %22 = memref.load %arg4[%c1_15, %c0_16] : memref<3x3xf32, #tpu.memory_space<smem>>
    %c1_17 = arith.constant 1 : index
    %c0_18 = arith.constant 0 : index
    %23 = memref.load %arg5[%c1_17, %c0_18] : memref<3x3xf32, #tpu.memory_space<smem>>
    %c1_19 = arith.constant 1 : index
    %c2_20 = arith.constant 2 : index
    %24 = memref.load %arg4[%c1_19, %c2_20] : memref<3x3xf32, #tpu.memory_space<smem>>
    %c1_21 = arith.constant 1 : index
    %c2_22 = arith.constant 2 : index
    %25 = memref.load %arg5[%c1_21, %c2_22] : memref<3x3xf32, #tpu.memory_space<smem>>
    %c2_23 = arith.constant 2 : index
    %c0_24 = arith.constant 0 : index
    %26 = memref.load %arg4[%c2_23, %c0_24] : memref<3x3xf32, #tpu.memory_space<smem>>
    %c2_25 = arith.constant 2 : index
    %c0_26 = arith.constant 0 : index
    %27 = memref.load %arg5[%c2_25, %c0_26] : memref<3x3xf32, #tpu.memory_space<smem>>
    %c2_27 = arith.constant 2 : index
    %c1_28 = arith.constant 1 : index
    %28 = memref.load %arg4[%c2_27, %c1_28] : memref<3x3xf32, #tpu.memory_space<smem>>
    %c2_29 = arith.constant 2 : index
    %c1_30 = arith.constant 1 : index
    %29 = memref.load %arg5[%c2_29, %c1_30] : memref<3x3xf32, #tpu.memory_space<smem>>
    %c2_31 = arith.constant 2 : index
    %c2_32 = arith.constant 2 : index
    %30 = memref.load %arg4[%c2_31, %c2_32] : memref<3x3xf32, #tpu.memory_space<smem>>
    %c2_33 = arith.constant 2 : index
    %c2_34 = arith.constant 2 : index
    %31 = memref.load %arg5[%c2_33, %c2_34] : memref<3x3xf32, #tpu.memory_space<smem>>
    %c0_35 = arith.constant 0 : index
    %c0_36 = arith.constant 0 : index
    %c0_37 = arith.constant 0 : index
    %32 = vector.load %arg2[%c0_35, %c0_36, %c0_37] : memref<1x8x256xf32, #tpu.memory_space<vmem>>, vector<1x8x256xf32>
    %33 = vector.shape_cast %32 : vector<1x8x256xf32> to vector<8x256xf32>
    %c0_38 = arith.constant 0 : index
    %c0_39 = arith.constant 0 : index
    %c0_40 = arith.constant 0 : index
    %34 = vector.load %arg3[%c0_38, %c0_39, %c0_40] : memref<1x8x256xf32, #tpu.memory_space<vmem>>, vector<1x8x256xf32>
    %35 = vector.shape_cast %34 : vector<1x8x256xf32> to vector<8x256xf32>
    %cst = arith.constant dense<0xFF800000> : vector<256xf32>
    %36 = vector.multi_reduction <maximumf>, %35, %cst [0] : vector<8x256xf32> to vector<256xf32>
    %37 = vector.shape_cast %36 : vector<256xf32> to vector<1x256xf32>
    %38 = vector.broadcast %14 : f32 to vector<1x256xf32>
    %39 = arith.mulf %38, %37 : vector<1x256xf32>
    %40 = vector.broadcast %15 : f32 to vector<1x256xf32>
    %41 = arith.mulf %40, %37 : vector<1x256xf32>
    %c17_i32 = arith.constant 17 : i32
    %42 = tpu.dynamic_rotate %37 by %c17_i32 dim 1 : vector<1x256xf32>, i32 -> vector<1x256xf32>
    %cst_41 = arith.constant 0.000000e+00 : f32
    %43 = vector.broadcast %cst_41 : f32 to vector<1x256xf32>
    %44 = arith.select %10, %42, %43 : vector<1x256xi1>, vector<1x256xf32>
    %45 = vector.broadcast %16 : f32 to vector<1x256xf32>
    %46 = arith.mulf %45, %44 : vector<1x256xf32>
    %47 = arith.addf %39, %46 : vector<1x256xf32>
    %48 = vector.broadcast %17 : f32 to vector<1x256xf32>
    %49 = arith.mulf %48, %44 : vector<1x256xf32>
    %50 = arith.addf %41, %49 : vector<1x256xf32>
    %c16_i32_42 = arith.constant 16 : i32
    %51 = tpu.dynamic_rotate %37 by %c16_i32_42 dim 1 : vector<1x256xf32>, i32 -> vector<1x256xf32>
    %cst_43 = arith.constant 0.000000e+00 : f32
    %52 = vector.broadcast %cst_43 : f32 to vector<1x256xf32>
    %53 = arith.select %3, %51, %52 : vector<1x256xi1>, vector<1x256xf32>
    %54 = vector.broadcast %18 : f32 to vector<1x256xf32>
    %55 = arith.mulf %54, %53 : vector<1x256xf32>
    %56 = arith.addf %47, %55 : vector<1x256xf32>
    %57 = vector.broadcast %19 : f32 to vector<1x256xf32>
    %58 = arith.mulf %57, %53 : vector<1x256xf32>
    %59 = arith.addf %50, %58 : vector<1x256xf32>
    %c15_i32_44 = arith.constant 15 : i32
    %60 = tpu.dynamic_rotate %37 by %c15_i32_44 dim 1 : vector<1x256xf32>, i32 -> vector<1x256xf32>
    %cst_45 = arith.constant 0.000000e+00 : f32
    %61 = vector.broadcast %cst_45 : f32 to vector<1x256xf32>
    %62 = arith.select %11, %60, %61 : vector<1x256xi1>, vector<1x256xf32>
    %63 = vector.broadcast %20 : f32 to vector<1x256xf32>
    %64 = arith.mulf %63, %62 : vector<1x256xf32>
    %65 = arith.addf %56, %64 : vector<1x256xf32>
    %66 = vector.broadcast %21 : f32 to vector<1x256xf32>
    %67 = arith.mulf %66, %62 : vector<1x256xf32>
    %68 = arith.addf %59, %67 : vector<1x256xf32>
    %c1_i32_46 = arith.constant 1 : i32
    %69 = tpu.dynamic_rotate %37 by %c1_i32_46 dim 1 : vector<1x256xf32>, i32 -> vector<1x256xf32>
    %cst_47 = arith.constant 0.000000e+00 : f32
    %70 = vector.broadcast %cst_47 : f32 to vector<1x256xf32>
    %71 = arith.select %7, %69, %70 : vector<1x256xi1>, vector<1x256xf32>
    %72 = vector.broadcast %22 : f32 to vector<1x256xf32>
    %73 = arith.mulf %72, %71 : vector<1x256xf32>
    %74 = arith.addf %65, %73 : vector<1x256xf32>
    %75 = vector.broadcast %23 : f32 to vector<1x256xf32>
    %76 = arith.mulf %75, %71 : vector<1x256xf32>
    %77 = arith.addf %68, %76 : vector<1x256xf32>
    %c255_i32 = arith.constant 255 : i32
    %78 = tpu.dynamic_rotate %37 by %c255_i32 dim 1 : vector<1x256xf32>, i32 -> vector<1x256xf32>
    %cst_48 = arith.constant 0.000000e+00 : f32
    %79 = vector.broadcast %cst_48 : f32 to vector<1x256xf32>
    %80 = arith.select %9, %78, %79 : vector<1x256xi1>, vector<1x256xf32>
    %81 = vector.broadcast %24 : f32 to vector<1x256xf32>
    %82 = arith.mulf %81, %80 : vector<1x256xf32>
    %83 = arith.addf %74, %82 : vector<1x256xf32>
    %84 = vector.broadcast %25 : f32 to vector<1x256xf32>
    %85 = arith.mulf %84, %80 : vector<1x256xf32>
    %86 = arith.addf %77, %85 : vector<1x256xf32>
    %c241_i32 = arith.constant 241 : i32
    %87 = tpu.dynamic_rotate %37 by %c241_i32 dim 1 : vector<1x256xf32>, i32 -> vector<1x256xf32>
    %cst_49 = arith.constant 0.000000e+00 : f32
    %88 = vector.broadcast %cst_49 : f32 to vector<1x256xf32>
    %89 = arith.select %12, %87, %88 : vector<1x256xi1>, vector<1x256xf32>
    %90 = vector.broadcast %26 : f32 to vector<1x256xf32>
    %91 = arith.mulf %90, %89 : vector<1x256xf32>
    %92 = arith.addf %83, %91 : vector<1x256xf32>
    %93 = vector.broadcast %27 : f32 to vector<1x256xf32>
    %94 = arith.mulf %93, %89 : vector<1x256xf32>
    %95 = arith.addf %86, %94 : vector<1x256xf32>
    %c240_i32_50 = arith.constant 240 : i32
    %96 = tpu.dynamic_rotate %37 by %c240_i32_50 dim 1 : vector<1x256xf32>, i32 -> vector<1x256xf32>
    %cst_51 = arith.constant 0.000000e+00 : f32
    %97 = vector.broadcast %cst_51 : f32 to vector<1x256xf32>
    %98 = arith.select %5, %96, %97 : vector<1x256xi1>, vector<1x256xf32>
    %99 = vector.broadcast %28 : f32 to vector<1x256xf32>
    %100 = arith.mulf %99, %98 : vector<1x256xf32>
    %101 = arith.addf %92, %100 : vector<1x256xf32>
    %102 = vector.broadcast %29 : f32 to vector<1x256xf32>
    %103 = arith.mulf %102, %98 : vector<1x256xf32>
    %104 = arith.addf %95, %103 : vector<1x256xf32>
    %c239_i32 = arith.constant 239 : i32
    %105 = tpu.dynamic_rotate %37 by %c239_i32 dim 1 : vector<1x256xf32>, i32 -> vector<1x256xf32>
    %cst_52 = arith.constant 0.000000e+00 : f32
    %106 = vector.broadcast %cst_52 : f32 to vector<1x256xf32>
    %107 = arith.select %13, %105, %106 : vector<1x256xi1>, vector<1x256xf32>
    %108 = vector.broadcast %30 : f32 to vector<1x256xf32>
    %109 = arith.mulf %108, %107 : vector<1x256xf32>
    %110 = arith.addf %101, %109 : vector<1x256xf32>
    %111 = vector.broadcast %31 : f32 to vector<1x256xf32>
    %112 = arith.mulf %111, %107 : vector<1x256xf32>
    %113 = arith.addf %104, %112 : vector<1x256xf32>
    %114 = arith.negf %110 : vector<1x256xf32>
    %115 = math.exp %114 : vector<1x256xf32>
    %cst_53 = arith.constant 1.000000e+00 : f32
    %116 = vector.broadcast %cst_53 : f32 to vector<1x256xf32>
    %117 = arith.addf %116, %115 : vector<1x256xf32>
    %118 = arith.divf %116, %117 : vector<1x256xf32>
    %119 = arith.negf %113 : vector<1x256xf32>
    %120 = math.exp %119 : vector<1x256xf32>
    %cst_54 = arith.constant 1.000000e+00 : f32
    %121 = vector.broadcast %cst_54 : f32 to vector<1x256xf32>
    %122 = arith.addf %121, %120 : vector<1x256xf32>
    %123 = arith.divf %121, %122 : vector<1x256xf32>
    %cst_55 = arith.constant 1.000000e+00 : f32
    %124 = vector.broadcast %cst_55 : f32 to vector<1x256xf32>
    %125 = arith.addf %118, %124 : vector<1x256xf32>
    %126 = vector.broadcast %125 : vector<1x256xf32> to vector<8x256xf32>
    %127 = arith.mulf %33, %126 : vector<8x256xf32>
    %cst_56 = arith.constant 1.000000e+00 : f32
    %128 = vector.broadcast %cst_56 : f32 to vector<1x256xf32>
    %129 = arith.addf %123, %128 : vector<1x256xf32>
    %130 = vector.broadcast %129 : vector<1x256xf32> to vector<8x256xf32>
    %131 = arith.mulf %35, %130 : vector<8x256xf32>
    %cst_57 = arith.constant dense<0.000000e+00> : vector<8xf32>
    %132 = vector.multi_reduction <add>, %127, %cst_57 [1] : vector<8x256xf32> to vector<8xf32>
    %133 = vector.shape_cast %132 : vector<8xf32> to vector<8x1xf32>
    %cst_58 = arith.constant 2.560000e+02 : f32
    %134 = vector.broadcast %cst_58 : f32 to vector<8x1xf32>
    %135 = arith.divf %133, %134 : vector<8x1xf32>
    %c0_59 = arith.constant 0 : index
    %c0_60 = arith.constant 0 : index
    %136 = vector.load %arg6[%c0_59, %c0_60] : memref<2x8xf32, #tpu.memory_space<vmem>>, vector<2x8xf32>
    %cst_61 = arith.constant dense<0.000000e+00> : vector<2x1xf32>
    %137 = tpu.matmul %136, %135, %cst_61 {dimension_numbers = #tpu.dot_dimension_numbers<[1], [0], [0], [1], [0, 0, 1, 1], [], []>} : vector<2x8xf32>, vector<8x1xf32>, vector<2x1xf32> -> vector<2x1xf32>
    %c0_62 = arith.constant 0 : index
    %c0_63 = arith.constant 0 : index
    %138 = vector.load %arg7[%c0_62, %c0_63] : memref<2x1xf32, #tpu.memory_space<vmem>>, vector<2x1xf32>
    %139 = arith.addf %137, %138 : vector<2x1xf32>
    %cst_64 = arith.constant 0.000000e+00 : f32
    %140 = vector.broadcast %cst_64 : f32 to vector<2x1xf32>
    %141 = arith.maximumf %139, %140 : vector<2x1xf32>
    %c0_65 = arith.constant 0 : index
    %c0_66 = arith.constant 0 : index
    %142 = vector.load %arg8[%c0_65, %c0_66] : memref<8x2xf32, #tpu.memory_space<vmem>>, vector<8x2xf32>
    %cst_67 = arith.constant dense<0.000000e+00> : vector<8x1xf32>
    %143 = tpu.matmul %142, %141, %cst_67 {dimension_numbers = #tpu.dot_dimension_numbers<[1], [0], [0], [1], [0, 0, 1, 1], [], []>} : vector<8x2xf32>, vector<2x1xf32>, vector<8x1xf32> -> vector<8x1xf32>
    %c0_68 = arith.constant 0 : index
    %c0_69 = arith.constant 0 : index
    %144 = vector.load %arg9[%c0_68, %c0_69] : memref<8x1xf32, #tpu.memory_space<vmem>>, vector<8x1xf32>
    %145 = arith.addf %143, %144 : vector<8x1xf32>
    %146 = arith.negf %145 : vector<8x1xf32>
    %147 = math.exp %146 : vector<8x1xf32>
    %cst_70 = arith.constant 1.000000e+00 : f32
    %148 = vector.broadcast %cst_70 : f32 to vector<8x1xf32>
    %149 = arith.addf %148, %147 : vector<8x1xf32>
    %150 = arith.divf %148, %149 : vector<8x1xf32>
    %151 = vector.broadcast %150 : vector<8x1xf32> to vector<8x256xf32>
    %152 = arith.mulf %127, %151 : vector<8x256xf32>
    %cst_71 = arith.constant dense<0.000000e+00> : vector<8xf32>
    %153 = vector.multi_reduction <add>, %131, %cst_71 [1] : vector<8x256xf32> to vector<8xf32>
    %154 = vector.shape_cast %153 : vector<8xf32> to vector<8x1xf32>
    %cst_72 = arith.constant 2.560000e+02 : f32
    %155 = vector.broadcast %cst_72 : f32 to vector<8x1xf32>
    %156 = arith.divf %154, %155 : vector<8x1xf32>
    %c0_73 = arith.constant 0 : index
    %c0_74 = arith.constant 0 : index
    %157 = vector.load %arg10[%c0_73, %c0_74] : memref<2x8xf32, #tpu.memory_space<vmem>>, vector<2x8xf32>
    %cst_75 = arith.constant dense<0.000000e+00> : vector<2x1xf32>
    %158 = tpu.matmul %157, %156, %cst_75 {dimension_numbers = #tpu.dot_dimension_numbers<[1], [0], [0], [1], [0, 0, 1, 1], [], []>} : vector<2x8xf32>, vector<8x1xf32>, vector<2x1xf32> -> vector<2x1xf32>
    %c0_76 = arith.constant 0 : index
    %c0_77 = arith.constant 0 : index
    %159 = vector.load %arg11[%c0_76, %c0_77] : memref<2x1xf32, #tpu.memory_space<vmem>>, vector<2x1xf32>
    %160 = arith.addf %158, %159 : vector<2x1xf32>
    %cst_78 = arith.constant 0.000000e+00 : f32
    %161 = vector.broadcast %cst_78 : f32 to vector<2x1xf32>
    %162 = arith.maximumf %160, %161 : vector<2x1xf32>
    %c0_79 = arith.constant 0 : index
    %c0_80 = arith.constant 0 : index
    %163 = vector.load %arg12[%c0_79, %c0_80] : memref<8x2xf32, #tpu.memory_space<vmem>>, vector<8x2xf32>
    %cst_81 = arith.constant dense<0.000000e+00> : vector<8x1xf32>
    %164 = tpu.matmul %163, %162, %cst_81 {dimension_numbers = #tpu.dot_dimension_numbers<[1], [0], [0], [1], [0, 0, 1, 1], [], []>} : vector<8x2xf32>, vector<2x1xf32>, vector<8x1xf32> -> vector<8x1xf32>
    %c0_82 = arith.constant 0 : index
    %c0_83 = arith.constant 0 : index
    %165 = vector.load %arg13[%c0_82, %c0_83] : memref<8x1xf32, #tpu.memory_space<vmem>>, vector<8x1xf32>
    %166 = arith.addf %164, %165 : vector<8x1xf32>
    %167 = arith.negf %166 : vector<8x1xf32>
    %168 = math.exp %167 : vector<8x1xf32>
    %cst_84 = arith.constant 1.000000e+00 : f32
    %169 = vector.broadcast %cst_84 : f32 to vector<8x1xf32>
    %170 = arith.addf %169, %168 : vector<8x1xf32>
    %171 = arith.divf %169, %170 : vector<8x1xf32>
    %172 = vector.broadcast %171 : vector<8x1xf32> to vector<8x256xf32>
    %173 = arith.mulf %131, %172 : vector<8x256xf32>
    %174 = arith.addf %152, %173 : vector<8x256xf32>
    %c0_85 = arith.constant 0 : index
    %c0_86 = arith.constant 0 : index
    %c0_87 = arith.constant 0 : index
    %175 = vector.load %arg14[%c0_85, %c0_86, %c0_87] : memref<1x8x256xf32, #tpu.memory_space<vmem>>, vector<1x8x256xf32>
    %176 = vector.shape_cast %175 : vector<1x8x256xf32> to vector<8x256xf32>
    %177 = vector.shape_cast %174 : vector<8x256xf32> to vector<1x8x256xf32>
    tpu.vector_store %arg14[%c0_85, %c0_86, %c0_87], %177 {strides = array<i32>} : memref<1x8x256xf32, #tpu.memory_space<vmem>>, vector<1x8x256xf32>,
    %c0_88 = arith.constant 0 : index
    %c0_89 = arith.constant 0 : index
    %c0_90 = arith.constant 0 : index
    %178 = vector.load %arg15[%c0_88, %c0_89, %c0_90] : memref<1x8x256xf32, #tpu.memory_space<vmem>>, vector<1x8x256xf32>
    %179 = vector.shape_cast %178 : vector<1x8x256xf32> to vector<8x256xf32>
    %180 = vector.shape_cast %173 : vector<8x256xf32> to vector<1x8x256xf32>
    tpu.vector_store %arg15[%c0_88, %c0_89, %c0_90], %180 {strides = array<i32>} : memref<1x8x256xf32, #tpu.memory_space<vmem>>, vector<1x8x256xf32>,
    return
  }
  func.func @transform_0(%arg0: i32) -> (i32, i32) {
    %c0_i32 = arith.constant 0 : i32
    %c0_i32_0 = arith.constant 0 : i32
    %c0_i32_1 = arith.constant 0 : i32
    return %c0_i32, %c0_i32_0 : i32, i32
  }
  func.func @transform_1(%arg0: i32) -> (i32, i32, i32) {
    %c0_i32 = arith.constant 0 : i32
    %c0_i32_0 = arith.constant 0 : i32
    %c0_i32_1 = arith.constant 0 : i32
    return %arg0, %c0_i32, %c0_i32_0 : i32, i32, i32
  }
  func.func @transform_2(%arg0: i32) -> (i32, i32, i32) {
    %c0_i32 = arith.constant 0 : i32
    %c0_i32_0 = arith.constant 0 : i32
    %c0_i32_1 = arith.constant 0 : i32
    return %arg0, %c0_i32, %c0_i32_0 : i32, i32, i32
  }
  func.func @transform_3(%arg0: i32) -> (i32, i32) {
    %c0_i32 = arith.constant 0 : i32
    %c0_i32_0 = arith.constant 0 : i32
    %c0_i32_1 = arith.constant 0 : i32
    return %c0_i32, %c0_i32_0 : i32, i32
  }
  func.func @transform_4(%arg0: i32) -> (i32, i32) {
    %c0_i32 = arith.constant 0 : i32
    %c0_i32_0 = arith.constant 0 : i32
    %c0_i32_1 = arith.constant 0 : i32
    return %c0_i32, %c0_i32_0 : i32, i32
  }
  func.func @transform_5(%arg0: i32) -> (i32, i32) {
    %c0_i32 = arith.constant 0 : i32
    %c0_i32_0 = arith.constant 0 : i32
    %c0_i32_1 = arith.constant 0 : i32
    return %c0_i32, %c0_i32_0 : i32, i32
  }
  func.func @transform_6(%arg0: i32) -> (i32, i32) {
    %c0_i32 = arith.constant 0 : i32
    %c0_i32_0 = arith.constant 0 : i32
    %c0_i32_1 = arith.constant 0 : i32
    return %c0_i32, %c0_i32_0 : i32, i32
  }
  func.func @transform_7(%arg0: i32) -> (i32, i32) {
    %c0_i32 = arith.constant 0 : i32
    %c0_i32_0 = arith.constant 0 : i32
    %c0_i32_1 = arith.constant 0 : i32
    return %c0_i32, %c0_i32_0 : i32, i32
  }
  func.func @transform_8(%arg0: i32) -> (i32, i32) {
    %c0_i32 = arith.constant 0 : i32
    %c0_i32_0 = arith.constant 0 : i32
    %c0_i32_1 = arith.constant 0 : i32
    return %c0_i32, %c0_i32_0 : i32, i32
  }
  func.func @transform_9(%arg0: i32) -> (i32, i32) {
    %c0_i32 = arith.constant 0 : i32
    %c0_i32_0 = arith.constant 0 : i32
    %c0_i32_1 = arith.constant 0 : i32
    return %c0_i32, %c0_i32_0 : i32, i32
  }
  func.func @transform_10(%arg0: i32) -> (i32, i32) {
    %c0_i32 = arith.constant 0 : i32
    %c0_i32_0 = arith.constant 0 : i32
    %c0_i32_1 = arith.constant 0 : i32
    return %c0_i32, %c0_i32_0 : i32, i32
  }
  func.func @transform_11(%arg0: i32) -> (i32, i32) {
    %c0_i32 = arith.constant 0 : i32
    %c0_i32_0 = arith.constant 0 : i32
    %c0_i32_1 = arith.constant 0 : i32
    return %c0_i32, %c0_i32_0 : i32, i32
  }
  func.func @transform_12(%arg0: i32) -> (i32, i32) {
    %c0_i32 = arith.constant 0 : i32
    %c0_i32_0 = arith.constant 0 : i32
    %c0_i32_1 = arith.constant 0 : i32
    return %c0_i32, %c0_i32_0 : i32, i32
  }
  func.func @transform_13(%arg0: i32) -> (i32, i32, i32) {
    %c0_i32 = arith.constant 0 : i32
    %c0_i32_0 = arith.constant 0 : i32
    %c0_i32_1 = arith.constant 0 : i32
    return %arg0, %c0_i32, %c0_i32_0 : i32, i32, i32
  }
  func.func @transform_14(%arg0: i32) -> (i32, i32, i32) {
    %c0_i32 = arith.constant 0 : i32
    %c0_i32_0 = arith.constant 0 : i32
    %c0_i32_1 = arith.constant 0 : i32
    return %arg0, %c0_i32, %c0_i32_0 : i32, i32, i32
  }
}

</mosaic_0001>

<bundles_post_ra>
// kernel: dse_forward.1
= control target key start
LH: loop header
LB: loop body
LE: loop exit
PB: predicated region body
PF: predicated region fallthrough
CT: control target
= control target key end

     0   :  { %20 = vsyncpa [#allocation3], 0  ;;  %s1995_s0 = inlined_call_operand.vmem [shape: s32[1,256], index: 0, kind: input, shape index: {}]   ;;  %s1996_s1 = inlined_call_operand.vmem [shape: f32[2,8,256], index: 1, kind: input, shape index: {}]   ;;  %s1997_s2 = inlined_call_operand.vmem [shape: f32[2,8,256], index: 2, kind: input, shape index: {}]   ;;  %s1998_s3 = inlined_call_operand.vmem [shape: f32[3,3], index: 3, kind: input, shape index: {}]   ;;  %s1999_s4 = inlined_call_operand.vmem [shape: f32[3,3], index: 4, kind: input, shape index: {}]   ;;  %s2000_s5 = inlined_call_operand.vmem [shape: f32[2,8], index: 5, kind: input, shape index: {}]   ;;  %s2001_s6 = inlined_call_operand.vmem [shape: f32[2,1], index: 6, kind: input, shape index: {}]   ;;  %s2002_s7 = inlined_call_operand.vmem [shape: f32[8,2], index: 7, kind: input, shape index: {}]   ;;  %s2003_s8 = inlined_call_operand.vmem [shape: f32[8,1], index: 8, kind: input, shape index: {}]   ;;  %s2004_s9 = inlined_call_operand.vmem [shape: f32[2,8], index: 9, kind: input, shape index: {}]   ;;  %s2005_s10 = inlined_call_operand.vmem [shape: f32[2,1], index: 10, kind: input, shape index: {}]   ;;  %s2006_s11 = inlined_call_operand.vmem [shape: f32[8,2], index: 11, kind: input, shape index: {}]   ;;  %s2007_s12 = inlined_call_operand.vmem [shape: f32[8,1], index: 12, kind: input, shape index: {}]   ;;  %s2008_s13 = inlined_call_operand.vmem [shape: f32[2,8,256], index: 13, kind: output, shape index: {0}]   ;;  %s2009_s14 = inlined_call_operand.vmem [shape: f32[2,8,256], index: 14, kind: output, shape index: {1}]  }
   0x1   :  { %21 = vsyncpa [#allocation5], 0  ;;  %s1637_s29 = smov 0  }
   0x2 LB: > { %s1643_s30 = sadd.s32 4294967295, %s1546_s29   ;;  %p1358_p0 = scmp.ge.s32.totalorder %s1546_s29, 1  ;;  %s1546_s29 = sphi %s1637_s29, %s27_s29  }
   0x3   : > { %p367_p1 = scmp.lt.s32.totalorder %s1546_s29, 3  ;;  %s383_s17 = sshll.u32 %s1998_s3, 4  ;;  %s384_s17 = int_to_ptr.vmem [resolvable:$true] %s383_s17 }
   0x4   : > { %p2010_p3 = scmp.eq.s32.totalorder %s1643_s30, 0  ;;  %s394_s21 = sshll.u32 %s1999_s4, 4  ;;  %s395_s21 = int_to_ptr.vmem [resolvable:$true] %s394_s21 }
   0x5   : > { %p1650_p2 = pnand %p1358_p0, %p367_p1  ;;  %s1502_s23 = scalar_lea.vmem %s384_s17, 64 }
   0x6   : > { %p1503_p6 = scmp.ne.s32.totalorder %s384_s17, %s1502_s23  ;;  %p1510_p10 = scmp.lt.s32.totalorder %s384_s17, %s384_s17 }
   0x7   : > { %s2012_s18 = scalar_select %p1650_p2, 1, 0 }
   0x8   : > { %p1443_p4 = pneg %p1650_p2  ;;  %p1511_p11 = scmp.lt.s32.totalorder %s1502_s23, %s1502_s23 }
   0xa   : > { %p1662_p5 = pnand %p2010_p3, %p1443_p4  ;;  %p1512_p12 = por %p1511_p11, %p1510_p10 }
   0xc   : > { %p1504_p7 = pneg %p1662_p5 }
   0xe   : > { %p1505_p8 = pnand %p1504_p7, %p1503_p6 }
  0x10   : > { %p1506_p9 = pneg %p1505_p8 }
  0x12   : > { %p1513_p13 = pnand %p1512_p12, %p1506_p9 }
  0x14   : > { %1516 = shalt.err (!%p1513_p13)
}
  0x15   : > { %s1548_s24 = smov [#allocation2]   ;;  %s1517_s25 = scalar_lea.vmem %s395_s21, 64 }
  0x16   : > { %1446 = dma.vmem_to_smem (!%p1662_p5), %s384_s17, 64, %s1548_s24, [#allocation3]  }
  0x17   : > { %p1518_p0 = scmp.ne.s32.totalorder %s395_s21, %s1517_s25  ;;  %p1525_p3 = scmp.lt.s32.totalorder %s395_s21, %s395_s21 }
  0x18   : > { %p1526_p2 = scmp.lt.s32.totalorder %s1517_s25, %s1517_s25 }
  0x19   : > { %p1520_p1 = pnand %p1518_p0, %p1504_p7 }
  0x1a   : > { %p1527_p6 = por %p1526_p2, %p1525_p3 }
  0x1b   : > { %p1521_p4 = pneg %p1520_p1 }
  0x1d   : > { %p1528_p8 = pnand %p1527_p6, %p1521_p4 }
  0x1f   : > { %1531 = shalt.err (!%p1528_p8)
}
  0x20   : > { %s1549_s26 = smov [#allocation4]   ;;  %p2014_p9 = scmp.ne.s32.totalorder %s2012_s18, 0 }
  0x21   : > { %1449 = dma.vmem_to_smem (!%p1662_p5), %s395_s21, 64, %s1549_s26, [#allocation5]  }
  0x22   : > { %447 = sbr.rel (%p2014_p9) target bundleno = 955 (0x3bb), region = 72  ;;  %p2015_p10 = scmp.eq.s32.totalorder (!%p2014_p9), %s1643_s30, 0 }
  0x27   : > { %1537 = dma.done.wait (%p2015_p10), [#allocation3], 64   ;;  %p2016_p11 = pmov %p2015_p10 }
  0x28   : > { %p2017_p7 = pmov %p2015_p10 }
  0x29   : > { %1539 = vsyncadd (%p2016_p11), [#allocation3], 4294967232 }
  0x2a   : > { %1541 = dma.done.wait (%p2017_p7), [#allocation5], 64   ;;  %p2018_p2 = pmov %p2017_p7 }
  0x2c   : > { %1543 = vsyncadd (%p2018_p2), [#allocation5], 4294967232 }
  0x2d   : > { %457 = sfence }
  0x2e   : > { %p508_p3 = scmp.lt.s32.totalorder %s1643_s30, 1  ;;  %v1550_v2 = vmov 0   ;;  %s1552_s17 = smov 1   ;;  %v528_v15 = vlaneseq  ;;  %v1723_v16 = vld [vmem:[%s1995_s0] sm:$0x3] }
  0x2f   : > { %1476 = vset.pattern.permute.xlu0 %v1550_v2  ;;  %1477 = vset.pattern.permute.xlu1 %v1550_v2  ;;  %s1553_s18 = smov 127   ;;  %s1554_s19 = smov 16   ;;  %vm536_vm0 = vcmp.ge.s32.totalorder %v1723_v16, 1  ;;  %v1559_v21 = vmov 1966171168   ;;  %vm537_vm1 = vcmp.lt.s32.totalorder %v1723_v16, 15 }
  0x30   : > { %s2030_s30 = smov (!%p508_p3, %s1643_s30), 1  ;;  %s1555_s20 = smov 15   ;;  %v540_v17 = vshrl.u32 %v528_v15, 7  ;;  %v538_v19 = vsel %vm536_vm0, 1, %v1550_v2  ;;  %v676_v22 = vunpack.c.l.s4 %v1559_v21  ;;  %v1745_v23 = vand.u32 127, %v528_v15 }
  0x31   : > { %s1684_s27 = sshll.u32 %s2030_s30, 4  ;;  %s1551_s30 = smov 17   ;;  %v551_v35 = vsel %vm537_vm1, 1, %v1550_v2 }
  0x32   : > { %s517_s16 = scalar_lea.vmem %s1997_s2, %s1684_s27  ;;  %s1556_s21 = smov 113   ;;  %v1730_v18 = vsub.s32 0, %v540_v17  ;;  %v1737_v20 = vsub.s32 1, %v540_v17  ;;  %v677_v26 = vunpack.c.0.s8 %v676_v22  ;;  %vm532_vm2 = vcmp.ge.s32.totalorder %v1745_v23, 16 }
  0x33   : > { %v1690_v0 = vld [vmem:[%s517_s16] sm:$0xff]  ;;  %v1692_v1 = vld [vmem:[%s517_s16 + $0x8] sm:$0xff]  ;;  %s1557_s22 = smov 112   ;;  %s1558_s23 = smov 111   ;;  %vm612_vm4 = vcmp.lt.s32.totalorder %v1745_v23, 17  ;;  %vm669_vm6 = vcmp.lt.s32.totalorder %v1745_v23, 1 }
  0x34   : > { %v590_v3 = vrot.slane %v1690_v0, 4  ;;  %v596_v4 = vrot.slane %v1692_v1, 4  ;;  %s1726_s26 = sld [smem:[#allocation2 + $0x81]]  ;;  %v542_v24 = vrot.slane %v538_v19, %v1730_v18  ;;  %v546_v25 = vrot.slane %v538_v19, %v1737_v20 }
  0x35   : > { %s1728_s28 = sld [smem:[#allocation4 + $0x81]]  ;;  %v1770_v34 = vsub.s32 %v677_v26, %v540_v17  ;;  %vm725_vm7 = vcmp.lt.s32.totalorder %v1745_v23, 127  ;;  %vm631_vm8 = vcmp.lt.s32.totalorder %v1745_v23, 16  ;;  %v555_v48 = vrot.slane %v551_v35, %v1730_v18 }
  0x36   : > { %v591_v5 = vmax.f32 %v1690_v0, %v590_v3  ;;  %v597_v6 = vmax.f32 %v1692_v1, %v596_v4  ;;  %s1732_s15 = sld [smem:[#allocation2]]  ;;  %vm1755_vm3 = vcmp.ne.s32.totalorder %v542_v24, 0  ;;  %vm1760_vm5 = vcmp.ne.s32.totalorder %v546_v25, 0 }
  0x37   : > { %s1739_s16 = sld [smem:[#allocation4]]  ;;  %vm1788_vm9 = vmand %vm532_vm2, %vm1755_vm3  ;;  %v559_v49 = vrot.slane %v551_v35, %v1737_v20  ;;  %vm650_vm10 = vcmp.lt.s32.totalorder %v1745_v23, 15  ;;  %vm1824_vm11 = vcmp.ne.s32.totalorder %v555_v48, 0  ;;  %v1833_v4 = vadd.s32 128, %v1745_v23 }
  0x38   : > { %v592_v7 = vrot.slane %v591_v5, 2  ;;  %v598_v8 = vrot.slane %v597_v6, 2  ;;  %s1802_s24 = sld [smem:[#allocation2 + $0x100]]  ;;  %vm781_vm14 = vcmp.lt.s32.totalorder %v1745_v23, 113  ;;  %vm800_vm15 = vcmp.lt.s32.totalorder %v1745_v23, 112 }
  0x39   : > { %s1812_s25 = sld [smem:[#allocation4 + $0x100]]  ;;  %vm1828_vm12 = vcmp.ne.s32.totalorder %v559_v49, 0  ;;  %vm535_vm13 = vcmp.lt.s32.totalorder %v1833_v4, 240 }
  0x3a   : > { %v593_v9 = vmax.f32 %v591_v5, %v592_v7  ;;  %v599_v10 = vmax.f32 %v597_v6, %v598_v8  ;;  %v602_v31 = vstv %s1726_s26  ;;  %s1819_s26 = sld [smem:[#allocation2 + $0x101]] }
  0x3b   : > { %v605_v32 = vstv %s1728_s28  ;;  %s1821_s28 = sld [smem:[#allocation4 + $0x101]] }
  0x3c   : > { %v594_v11 = vrot.slane %v593_v9, 1  ;;  %v600_v12 = vrot.slane %v599_v10, 1  ;;  %v617_v33 = vstv %s1732_s15  ;;  %s1885_s15 = sld [smem:[#allocation2 + $0x102]] }
  0x3d   : > { %v622_v36 = vstv %s1739_s16  ;;  %s1890_s16 = sld [smem:[#allocation4 + $0x102]] }
  0x3e   : > { %v1700_v13 = vmax.f32 %v593_v9, %v594_v11  ;;  %v1704_v14 = vmax.f32 %v599_v10, %v600_v12  ;;  %v786_v24 = vstv %s1802_s24 }
  0x40   : > { %608 = vrot.lane.b32.xlu1 %v1700_v13, %s1551_s30  ;;  %665 = vrot.lane.b32.xlu0 %v1700_v13, %s1552_s17  ;;  %v604_v40 = vmul.f32 %v602_v31, %v1704_v14  ;;  %v607_v41 = vmul.f32 %v605_v32, %v1704_v14  ;;  %v603_v42 = vmul.f32 %v602_v31, %v1700_v13 }
  0x41   : > { %v606_v45 = vmul.f32 %v605_v32, %v1700_v13 }
  0x44   : > { %610 = vrot.lane.b32.xlu1 %v1704_v14, %s1551_s30  ;;  %667 = vrot.lane.b32.xlu0 %v1704_v14, %s1552_s17  ;;  %s1741_s30 = sld [smem:[#allocation2 + $0x80]] }
  0x45   : > { %s1743_s17 = sld [smem:[#allocation4 + $0x80]] }
  0x48   : > { %723 = vrot.lane.b32.xlu1 %v1704_v14, %s1553_s18  ;;  %721 = vrot.lane.b32.xlu0 %v1700_v13, %s1553_s18  ;;  %s1748_s18 = sld [smem:[#allocation2 + $0x1]] }
  0x4a   : > { %v691_v37 = vstv %s1741_s30 }
  0x4b   : > { %v706_v38 = vstv %s1743_s17 }
  0x4c   : > { %629 = vrot.lane.b32.xlu1 %v1704_v14, %s1554_s19  ;;  %627 = vrot.lane.b32.xlu0 %v1700_v13, %s1554_s19  ;;  %s1751_s19 = sld [smem:[#allocation4 + $0x1]] }
  0x4e   : > { %v636_v43 = vstv %s1748_s18  ;;  %s512_s18 = scalar_lea.vmem %s1996_s1, %s1684_s27 }
  0x50   : > { %648 = vrot.lane.b32.xlu1 %v1704_v14, %s1555_s20  ;;  %646 = vrot.lane.b32.xlu0 %v1700_v13, %s1555_s20  ;;  %s1767_s20 = sld [smem:[#allocation2 + $0x82]] }
  0x52   : > { %v641_v47 = vstv %s1751_s19 }
  0x54   : > { %779 = vrot.lane.b32.xlu1 %v1704_v14, %s1556_s21  ;;  %777 = vrot.lane.b32.xlu0 %v1700_v13, %s1556_s21  ;;  %s1776_s21 = sld [smem:[#allocation4 + $0x82]] }
  0x56   : > { %v747_v12 = vstv %s1767_s20 }
  0x58   : > { %798 = vrot.lane.b32.xlu1 %v1704_v14, %s1557_s22  ;;  %796 = vrot.lane.b32.xlu0 %v1700_v13, %s1557_s22  ;;  %s1782_s22 = sld [smem:[#allocation2 + $0x2]] }
  0x5a   : > { %v762_v17 = vstv %s1776_s21 }
  0x5c   : > { %817 = vrot.lane.b32.xlu1 %v1704_v14, %s1558_s23  ;;  %815 = vrot.lane.b32.xlu0 %v1700_v13, %s1558_s23  ;;  %s1796_s23 = sld [smem:[#allocation4 + $0x2]] }
  0x5e   : > { %v655_v14 = vstv %s1782_s22 }
  0x62   : > { %v660_v15 = vstv %s1796_s23  ;;  %s527_s23 = scalar_lea.vmem %s2009_s14, %s1684_s27 }
  0xb2   : > { %v609_v28 = vpop.permute.xlu1 %608  ;;  %v666_v29 = vpop.permute.xlu0 %665 }
  0xb6   : > { %v611_v44 = vpop.permute.xlu1 %610  ;;  %v668_v46 = vpop.permute.xlu0 %667 }
  0xb7   : > { %v613_v50 = vsel %vm612_vm4, %v609_v28, %v611_v44  ;;  %v614_v51 = vsel %vm612_vm4, %v611_v44, %v609_v28  ;;  %v670_v52 = vsel %vm669_vm6, %v666_v29, %v668_v46  ;;  %v671_v53 = vsel %vm669_vm6, %v668_v46, %v666_v29 }
  0xb8   : > { %v615_v54 = vsel %vm1788_vm9, %v614_v51, 0.0  ;;  %v616_v55 = vsel %vm1760_vm5, %v613_v50, 0.0  ;;  %v674_v56 = vcombine.low %v671_v53, %v670_v52  ;;  %v791_v29 = vstv %s1812_s25 }
  0xb9   : > { %v618_v57 = vmul.f32 %v617_v33, %v615_v54  ;;  %v619_v58 = vmul.f32 %v617_v33, %v616_v55  ;;  %v623_v59 = vmul.f32 %v622_v36, %v615_v54  ;;  %v624_v60 = vmul.f32 %v622_v36, %v616_v55 }
  0xba   : > { %v681_v61 = vrot.slane %v674_v56, %v1770_v34  ;;  %v724_v62 = vpop.permute.xlu1 %723  ;;  %v722_v63 = vpop.permute.xlu0 %721  ;;  %vm1561_vm4 = vmmov 0   ;;  %vm970_vm6 = vcmask 1041408  }
  0xbb   : > { %v620_v5 = vadd.f32 %v618_v57, %v603_v42  ;;  %v621_v6 = vadd.f32 %v619_v58, %v604_v40  ;;  %v625_v7 = vadd.f32 %v623_v59, %v606_v45  ;;  %v626_v8 = vadd.f32 %v624_v60, %v607_v41 }
  0xbc   : > { %v688_v9 = vrot.slane %v681_v61, %v1770_v34  ;;  %v726_v10 = vsel %vm725_vm7, %v722_v63, %v724_v62  ;;  %v727_v11 = vsel %vm725_vm7, %v724_v62, %v722_v63  ;;  %v810_v40 = vstv %s1821_s28 }
  0xbd   : > { %v730_v13 = vcombine.low %v726_v10, %v727_v11  ;;  %vm966_vm7 = vcmask 15360  }
  0xbe   : > { %v690_v19 = vsel %vm536_vm0, %v688_v9, 0.0  ;;  %v630_v21 = vpop.permute.xlu1 %629  ;;  %v628_v22 = vpop.permute.xlu0 %627  ;;  %vm562_vm0 = vmand %vm532_vm2, %vm1824_vm11 }
  0xbf   : > { %v692_v25 = vmul.f32 %v691_v37, %v690_v19  ;;  %v737_v26 = vrot.slane %v730_v13, %v1770_v34  ;;  %v632_v28 = vsel %vm631_vm8, %v628_v22, %v630_v21  ;;  %v707_v31 = vmul.f32 %v706_v38, %v690_v19 }
  0xc0   : > { %v633_v32 = vsel %vm631_vm8, %v630_v21, %v628_v22  ;;  %v638_v33 = vmul.f32 %v636_v43, %v632_v28  ;;  %v643_v35 = vmul.f32 %v641_v47, %v632_v28  ;;  %v805_v37 = vstv %s1819_s26  ;;  %s522_s26 = scalar_lea.vmem %s2008_s13, %s1684_s27 }
  0xc1   : > { %v744_v36 = vrot.slane %v737_v26, %v1770_v34  ;;  %v634_v39 = vsel %vm532_vm2, %v633_v32, 0.0  ;;  %v697_v45 = vrot.slane %v692_v25, %v1730_v18  ;;  %v701_v38 = vrot.slane %v692_v25, %v1737_v20 }
  0xc2   : > { %v637_v41 = vmul.f32 %v636_v43, %v634_v39  ;;  %v642_v42 = vmul.f32 %v641_v47, %v634_v39  ;;  %v649_v44 = vpop.permute.xlu1 %648  ;;  %v647_v46 = vpop.permute.xlu0 %646  ;;  %v640_v48 = vadd.f32 %v638_v33, %v621_v6  ;;  %v645_v49 = vadd.f32 %v643_v35, %v626_v8 }
  0xc3   : > { %v746_v34 = vsel %vm537_vm1, %v744_v36, 0.0  ;;  %v651_v43 = vsel %vm650_vm10, %v647_v46, %v649_v44  ;;  %v712_v47 = vrot.slane %v707_v31, %v1730_v18  ;;  %v716_v50 = vrot.slane %v707_v31, %v1737_v20  ;;  %vm565_vm1 = vmand %vm535_vm13, %vm1760_vm5 }
  0xc4   : > { %v748_v51 = vmul.f32 %v747_v12, %v746_v34  ;;  %v763_v52 = vmul.f32 %v762_v17, %v746_v34  ;;  %v639_v53 = vadd.f32 %v637_v41, %v620_v5  ;;  %v644_v54 = vadd.f32 %v642_v42, %v625_v7 }
  0xc5   : > { %v652_v55 = vsel %vm650_vm10, %v649_v44, %v647_v46  ;;  %v654_v56 = vsel %vm1828_vm12, %v651_v43, 0.0  ;;  %vm819_vm2 = vcmp.lt.s32.totalorder %v1745_v23, 111  ;;  %v824_v43 = vstv %s1885_s15 }
  0xc6   : > { %v653_v16 = vsel %vm562_vm0, %v652_v55, 0.0  ;;  %v657_v57 = vmul.f32 %v655_v14, %v654_v56  ;;  %v662_v58 = vmul.f32 %v660_v15, %v654_v56  ;;  %v780_v59 = vpop.permute.xlu1 %779  ;;  %v753_v60 = vrot.slane %v748_v51, %v1730_v18  ;;  %v778_v61 = vpop.permute.xlu0 %777 }
  0xc7   : > { %v656_v62 = vmul.f32 %v655_v14, %v653_v16  ;;  %v661_v63 = vmul.f32 %v660_v15, %v653_v16  ;;  %v757_v5 = vrot.slane %v748_v51, %v1737_v20  ;;  %v768_v6 = vrot.slane %v763_v52, %v1730_v18 }
  0xc8   : > { %v659_v7 = vadd.f32 %v657_v57, %v640_v48  ;;  %v664_v8 = vadd.f32 %v662_v58, %v645_v49  ;;  %v772_v9 = vrot.slane %v763_v52, %v1737_v20  ;;  %v782_v10 = vsel %vm781_vm14, %v778_v61, %v780_v59 }
  0xc9   : > { %v658_v30 = vadd.f32 %v656_v62, %v639_v53  ;;  %v663_v11 = vadd.f32 %v661_v63, %v644_v54  ;;  %v783_v12 = vsel %vm781_vm14, %v780_v59, %v778_v61  ;;  %v784_v13 = vsel %vm1755_vm3, %v782_v10, 0.0  ;;  %vm567_vm3 = vmand %vm535_vm13, %vm1828_vm12 }
  0xca   : > { %v705_v14 = vadd.f32 %v701_v38, %v659_v7  ;;  %v720_v15 = vadd.f32 %v716_v50, %v664_v8  ;;  %v785_v17 = vsel %vm565_vm1, %v783_v12, 0.0  ;;  %v787_v20 = vmul.f32 %v786_v24, %v784_v13  ;;  %v799_v19 = vpop.permute.xlu1 %798  ;;  %v797_v21 = vpop.permute.xlu0 %796 }
  0xcb   : > { %v704_v22 = vadd.f32 %v697_v45, %v658_v30  ;;  %v719_v25 = vadd.f32 %v712_v47, %v663_v11  ;;  %v788_v26 = vmul.f32 %v786_v24, %v785_v17  ;;  %v792_v28 = vmul.f32 %v791_v29, %v784_v13 }
  0xcc   : > { %v761_v31 = vadd.f32 %v757_v5, %v705_v14  ;;  %v776_v32 = vadd.f32 %v772_v9, %v720_v15  ;;  %v793_v27 = vmul.f32 %v791_v29, %v785_v17  ;;  %v801_v33 = vsel %vm800_vm15, %v797_v21, %v799_v19  ;;  %v586_v15 = vld [vmem:[%s512_s18] sm:$0xff] }
  0xcd   : > { %v760_v35 = vadd.f32 %v753_v60, %v704_v22  ;;  %v775_v36 = vadd.f32 %v768_v6, %v719_v25  ;;  %v802_v39 = vsel %vm800_vm15, %v799_v19, %v797_v21  ;;  %v806_v24 = vmul.f32 %v805_v37, %v801_v33  ;;  %v587_v21 = vld [vmem:[%s512_s18 + $0x8] sm:$0xff] }
  0xce   : > { %v790_v41 = vadd.f32 %v788_v26, %v761_v31  ;;  %v795_v42 = vadd.f32 %v793_v27, %v776_v32  ;;  %v804_v44 = vsel %vm535_vm13, %v802_v39, 0.0  ;;  %v811_v45 = vmul.f32 %v810_v40, %v801_v33  ;;  %v818_v29 = vpop.permute.xlu1 %817  ;;  %v816_v38 = vpop.permute.xlu0 %815 }
  0xcf   : > { %v789_v46 = vadd.f32 %v787_v20, %v760_v35  ;;  %v794_v48 = vadd.f32 %v792_v28, %v775_v36  ;;  %v807_v49 = vmul.f32 %v805_v37, %v804_v44  ;;  %v812_v34 = vmul.f32 %v810_v40, %v804_v44  ;;  %v1061_v44 = vld [vmem:[%s2004_s9] sm:$0x3] }
  0xd0   : > { %v829_v47 = vstv %s1890_s16  ;;  %v820_v50 = vsel %vm819_vm2, %v816_v38, %v818_v29  ;;  %v821_v51 = vsel %vm819_vm2, %v818_v29, %v816_v38  ;;  %vm889_vm5 = vcmask 64512  }
  0xd1   : > { %v808_v52 = vadd.f32 %v806_v24, %v789_v46  ;;  %v809_v53 = vadd.f32 %v807_v49, %v790_v41  ;;  %v813_v54 = vadd.f32 %v811_v45, %v794_v48  ;;  %v814_v55 = vadd.f32 %v812_v34, %v795_v42  ;;  %v888_v45 = vld [vmem:[%s2001_s6] sm:$0x3] }
  0xd2   : > { %v822_v37 = vsel %vm1824_vm11, %v820_v50, 0.0  ;;  %v823_v40 = vsel %vm567_vm3, %v821_v51, 0.0  ;;  %v1560_v24 = vmov 0.0   ;;  %v1062_v48 = vld [vmem:[%s2005_s10] sm:$0x3] }
  0xd3   : > { %v825_v3 = vmul.f32 %v824_v43, %v822_v37  ;;  %v826_v56 = vmul.f32 %v824_v43, %v823_v40  ;;  %v830_v4 = vmul.f32 %v829_v47, %v822_v37  ;;  %v831_v16 = vmul.f32 %v829_v47, %v823_v40  ;;  %1415 = vmatprep.subr.mxu0 %v1560_v24  ;;  %v964_v34 = vld [vmem:[%s2002_s7] sm:$0xff] }
  0xd4   : > { %1417 = vmatprep.mubr.msk.f32.mxu0 %vm1561_vm4, %v1560_v24  ;;  %1420 = vmatprep.subr.mxu1 %v1560_v24  ;;  %v1138_v40 = vld [vmem:[%s2007_s12] sm:$0xff] }
  0xd5   : > { %v827_v57 = vadd.f32 %v825_v3, %v808_v52  ;;  %v828_v58 = vadd.f32 %v826_v56, %v809_v53  ;;  %v832_v59 = vadd.f32 %v830_v4, %v813_v54  ;;  %v833_v60 = vadd.f32 %v831_v16, %v814_v55  ;;  %1422 = vmatprep.mubr.msk.f32.mxu1 %vm1561_vm4, %v1560_v24  ;;  %v1137_v52 = vld [vmem:[%s2006_s11] sm:$0xff] }
  0xd6   : > { %v965_v53 = vld [vmem:[%s2003_s8] sm:$0xff] }
  0xd7   : > { %v1389_v61 = vmul.f32 -1.442695, %v827_v57  ;;  %v1390_v62 = vmul.f32 -1.442695, %v828_v58  ;;  %v1391_v23 = vmul.f32 -1.442695, %v832_v59 }
  0xd8   : > { %v1392_v63 = vmul.f32 -1.442695, %v833_v60 }
  0xd9   : > { %1478 = vpow2.f32 %v1389_v61 }
  0xda   : > { %1480 = vpow2.f32 %v1390_v62 }
  0xdb   : > { %1482 = vpow2.f32 %v1391_v23 }
  0xdc   : > { %1484 = vpow2.f32 %v1392_v63 }
  0xe6   : > { %v1479_v2 = vpop.eup %1478 }
  0xe7   : > { %v1481_v5 = vpop.eup %1480  ;;  %v840_v6 = vadd.f32 1.0, %v1479_v2 }
  0xe8   : > { %v1483_v7 = vpop.eup %1482  ;;  %v841_v8 = vadd.f32 1.0, %v1481_v5 }
  0xe9   : > { %v1485_v9 = vpop.eup %1484  ;;  %1486 = vrcp.f32 %v840_v6  ;;  %v852_v10 = vadd.f32 1.0, %v1483_v7 }
  0xea   : > { %1488 = vrcp.f32 %v841_v8  ;;  %v853_v30 = vadd.f32 1.0, %v1485_v9 }
  0xeb   : > { %1490 = vrcp.f32 %v852_v10 }
  0xec   : > { %1492 = vrcp.f32 %v853_v30 }
  0xf6   : > { %v1487_v11 = vpop.eup %1486 }
  0xf7   : > { %v1489_v12 = vpop.eup %1488  ;;  %v858_v13 = vadd.f32 1.0, %v1487_v11 }
  0xf8   : > { %v1491_v14 = vpop.eup %1490  ;;  %v859_v17 = vadd.f32 1.0, %v1489_v12 }
  0xf9   : > { %v1493_v20 = vpop.eup %1492  ;;  %v870_v19 = vadd.f32 1.0, %v1491_v14  ;;  %v863_v22 = vrot.slane %v858_v13, %v1730_v18 }
  0xfa   : > { %v871_v25 = vadd.f32 1.0, %v1493_v20  ;;  %v867_v26 = vrot.slane %v859_v17, %v1730_v18 }
  0xfb   : > { %v875_v28 = vrot.slane %v870_v19, %v1730_v18  ;;  %v1937_v31 = vmul.f32 %v863_v22, %v586_v15 }
  0xfc   : > { %v879_v32 = vrot.slane %v871_v25, %v1730_v18  ;;  %v1940_v27 = vmul.f32 %v867_v26, %v587_v21 }
  0xfd   : > { %v1943_v33 = vmul.f32 %v875_v28, %v1690_v0 }
  0xfe   : > { %v1946_v35 = vmul.f32 %v879_v32, %v1692_v1  ;;  %v882_v36 = vadd.f32 %v1940_v27, %v1937_v31  ;;  %v887_v1 = vld [vmem:[%s2000_s5] sm:$0x3] }
 0x100   : > { %v1057_v39 = vadd.f32 %v1946_v35, %v1943_v33  ;;  %883 = vadd.xlane.f32.xlu0 %v882_v36 }
 0x102   : > { %1058 = vadd.xlane.f32.xlu1 %v1057_v39 }
 0x189   : > { %v884_v0 = vpop.xlane.xlu0 %883 }
 0x18a   : > { %v886_v18 = vmul.f32 0.00390625, %v884_v0 }
 0x18b   : > { %v1059_v41 = vpop.xlane.xlu1 %1058 }
 0x18c   : > { %v1060_v42 = vmul.f32 0.00390625, %v1059_v41  ;;  %1416 = vmatpush3.msra.mxu0 %v886_v18 }
 0x18d   : > { %1418 = vmatmul.mubr.msk.f32.vlgmr.msra.gmra.mxu0 %vm889_vm5, %v887_v1  ;;  %1425 = vmatprep.subr.mxu0 %v1560_v24 }
 0x18e   : > { %1426 = vmatpush3.msra.mxu0 %v1060_v42  ;;  %1427 = vmatprep.mubr.msk.f32.mxu0 %vm1561_vm4, %v1560_v24 }
 0x191   : > { %1428 = vmatmul.mubr.msk.f32.vlgmr.msra.gmra.mxu0 %vm889_vm5, %v1061_v44 }
 0x24d   : > { %v959_v29 = vpop.f32.mrf.mxu0 }
 0x24e   : > { %v960_v38 = vadd.f32 %v959_v29, %v888_v45 }
 0x24f   : > { %v1419_v46 = vpop.f32.mrf.mxu0 }
 0x250   : > { %v963_v49 = vmax.f32 %v960_v38, 0.0 }
 0x251   : > { %v1132_v43 = vpop.f32.mrf.mxu0 }
 0x252   : > { %v1133_v47 = vadd.f32 %v1132_v43, %v1062_v48  ;;  %1421 = vmatpush3.msk.msra.mxu1 %vm970_vm6, %v963_v49 }
 0x253   : > { %1423 = vmatmul.mubr.msk.f32.vlgmr.msra.gmra.mxu1 %vm966_vm7, %v964_v34  ;;  %v1429_v50 = vpop.f32.mrf.mxu0  ;;  %1430 = vmatprep.subr.mxu1 %v1560_v24 }
 0x254   : > { %v1136_v51 = vmax.f32 %v1133_v47, 0.0  ;;  %1432 = vmatprep.mubr.msk.f32.mxu1 %vm1561_vm4, %v1560_v24 }
 0x256   : > { %1431 = vmatpush3.msk.msra.mxu1 %vm970_vm6, %v1136_v51 }
 0x257   : > { %1433 = vmatmul.mubr.msk.f32.vlgmr.msra.gmra.mxu1 %vm966_vm7, %v1137_v52 }
 0x313   : > { %v1040_v54 = vpop.f32.mrf.mxu1 }
 0x314   : > { %v1041_v55 = vadd.f32 %v1040_v54, %v965_v53 }
 0x315   : > { %v1424_v37 = vpop.f32.mrf.mxu1 }
 0x316   : > { %v1396_v3 = vmul.f32 -1.442695, %v1041_v55 }
 0x317   : > { %v1211_v56 = vpop.f32.mrf.mxu1 }
 0x318   : > { %1494 = vpow2.f32 %v1396_v3  ;;  %v1212_v4 = vadd.f32 %v1211_v56, %v1138_v40 }
 0x319   : > { %v1434_v16 = vpop.f32.mrf.mxu1 }
 0x31a   : > { %v1400_v57 = vmul.f32 -1.442695, %v1212_v4 }
 0x31c   : > { %1496 = vpow2.f32 %v1400_v57 }
 0x325   : > { %v1495_v58 = vpop.eup %1494 }
 0x326   : > { %v1047_v59 = vadd.f32 1.0, %v1495_v58 }
 0x328   : > { %1498 = vrcp.f32 %v1047_v59 }
 0x329   : > { %v1497_v60 = vpop.eup %1496 }
 0x32a   : > { %v1218_v61 = vadd.f32 1.0, %v1497_v60 }
 0x32c   : > { %1500 = vrcp.f32 %v1218_v61 }
 0x335   : > { %v1499_v62 = vpop.eup %1498 }
 0x336   : > { %1052 = vperm.xlu0 %1476, %v1499_v62  }
 0x339   : > { %v1501_v23 = vpop.eup %1500 }
 0x33a   : > { %1223 = vperm.xlu1 %1477, %v1501_v23  }
 0x3b1   : > { %v1053_v63 = vpop.permute.xlu0 %1052 }
 0x3b2   : > { %v1055_v5 = vmul.f32 %v1053_v63, %v1937_v31  ;;  %v1056_v6 = vmul.f32 %v1053_v63, %v1940_v27 }
 0x3b5   : > { %v1224_v2 = vpop.permute.xlu1 %1223 }
 0x3b6   : > { %v1226_v7 = vmul.f32 %v1224_v2, %v1943_v33  ;;  %v1227_v8 = vmul.f32 %v1224_v2, %v1946_v35 }
 0x3b8   : > { %v1228_v9 = vadd.f32 %v1226_v7, %v1055_v5  ;;  %v1229_v10 = vadd.f32 %v1227_v8, %v1056_v6  ;;  %1232 = vst [vmem:[%s527_s23] sm:$0xff] %v1226_v7  ;;  %1233 = vst [vmem:[%s527_s23 + $0x8] sm:$0xff] %v1227_v8 }
 0x3ba   : > { %1230 = vst [vmem:[%s522_s26] sm:$0xff] %v1228_v9  ;;  %1231 = vst [vmem:[%s522_s26 + $0x8] sm:$0xff] %v1229_v10 }
 0x3bb PF: > { %s27_s29 = sadd.s32 1, %s1546_s29  }
 0x3bc   : > { %p24_p5 = scmp.ge.s32.totalorder %s27_s29, 4  }
 0x3be   :  { %26 = sbr.rel (!%p24_p5) target bundleno = 2 (0x2), region = 126 }
 0x3c3   :  { %1271 = vsyncpa [#allocation3], 1 }
 0x3c4   :  { %1273 = vsyncpa [#allocation3 + $0x1], 1 }
 0x3c5   :  { %1274 = vsyncpa [#allocation5], 1 }

</bundles_post_ra>
